<compile_context>
chip_gen: v7x
topology: tpu7x:2x2x1
jax: 0.10.0
libtpu: 0.0.40
codegen_flags: <defaults>
</compile_context>

<pallas_src>
import functools

import jax
import jax.numpy as jnp
from jax.experimental import pallas as pl
from jax.experimental.pallas import tpu as pltpu


def _round_up(x, m):
    return ((x + m - 1) // m) * m


def mlp_recon_kernel(xt_ref, w1_ref, b1_ref, w2_ref, b2_ref, w3_ref, b3_ref,
                     o_ref, *, use_bf16):
    xt = xt_ref[...]                                    # (3, TB)   batch on lanes
    w1 = w1_ref[...]                                    # (H, 3)

    # ---- layer 1 + ReLU on the VPU (K=3 would waste a padded MXU pass) ----
    h1 = (w1[:, 0:1] * xt[0:1, :]
          + w1[:, 1:2] * xt[1:2, :]
          + w1[:, 2:3] * xt[2:3, :])                    # (H, TB)
    h1 = jnp.maximum(h1 + b1_ref[...], 0.0)

    # ---- layer 2 + ReLU on the MXU ----
    lhs2 = w2_ref[...]                                  # (H, H)
    rhs2 = h1
    if use_bf16:
        lhs2 = lhs2.astype(jnp.bfloat16)
        rhs2 = rhs2.astype(jnp.bfloat16)
    h2 = jnp.dot(lhs2, rhs2, preferred_element_type=jnp.float32)   # (H, TB)
    h2 = jnp.maximum(h2 + b2_ref[...], 0.0)

    # ---- layer 3 + sigmoid + smoothing ----
    lhs3 = w3_ref[...]                                  # (3, H)
    rhs3 = h2
    if use_bf16:
        lhs3 = lhs3.astype(jnp.bfloat16)
        rhs3 = rhs3.astype(jnp.bfloat16)
    z = jnp.dot(lhs3, rhs3, preferred_element_type=jnp.float32)    # (3, TB)
    z = z + b3_ref[...]
    pG = jax.nn.sigmoid(z)                              # EUP
    pG = (pG + 0.001) * (1.0 / (1.0 + 3 * 0.001))       # multiply, not divide

    o_ref[...] = pG.astype(o_ref.dtype)                 # lane-dense store


def mlp_recon(x, w1, b1, w2, b2, w3, b3, *, block_b=None, use_bf16_matmul=False):
    """x: (B, 3) f32; w_i: (out, in) f32 (PyTorch-native); b_i: (out, 1) f32.

    Returns (B, 3) f32 == sigmoid-smoothed MLP output (matches MLPRecon.forward).
    """
    B, Din = x.shape
    H = w1.shape[0]
    Dout = w3.shape[0]
    assert w1.shape == (H, Din) and b1.shape == (H, 1)
    assert w2.shape == (H, H) and b2.shape == (H, 1)
    assert w3.shape == (Dout, H) and b3.shape == (Dout, 1)

    if block_b is None:
        # lane-dense tile; cap so intermediates stay small even for huge B
        block_b = min(1024, _round_up(B, 128))
    if block_b % 128 != 0:
        raise ValueError("block_b must be a multiple of 128 (batch lives on lanes)")

    # Pad batch to a multiple of the tile; padded columns are zeros (harmless)
    # and get sliced off below.
    B_pad = _round_up(B, block_b)
    xt = jnp.asarray(x, jnp.float32).T                  # (3, B)
    if B_pad != B:
        xt = jnp.pad(xt, ((0, 0), (0, B_pad - B)))

    grid = (B_pad // block_b,)

    kernel = functools.partial(mlp_recon_kernel, use_bf16=use_bf16_matmul)

    out_t = pl.pallas_call(
        kernel,
        out_shape=jax.ShapeDtypeStruct((Dout, B_pad), jnp.float32),
        grid_spec=pltpu.PrefetchScalarGridSpec(
            num_scalar_prefetch=0,
            grid=grid,
            in_specs=[
                pl.BlockSpec((Din, block_b), lambda i: (0, i)),   # x^T batch tile
                pl.BlockSpec((H, Din), lambda i: (0, 0)),         # W1 (resident)
                pl.BlockSpec((H, 1), lambda i: (0, 0)),           # b1
                pl.BlockSpec((H, H), lambda i: (0, 0)),           # W2
                pl.BlockSpec((H, 1), lambda i: (0, 0)),           # b2
                pl.BlockSpec((Dout, H), lambda i: (0, 0)),        # W3
                pl.BlockSpec((Dout, 1), lambda i: (0, 0)),        # b3
            ],
            out_specs=pl.BlockSpec((Dout, block_b), lambda i: (0, i)),
        ),
        compiler_params=pltpu.CompilerParams(
            dimension_semantics=("parallel",)),
    )(xt, w1, b1, w2, b2, w3, b3)

    return out_t.T[:B]                                   # back to (B, 3)


def _init_linear(key, fan_in, fan_out):
    # torch.nn.Linear default init: U(-1/sqrt(fan_in), 1/sqrt(fan_in)),
    # stored PyTorch-native as (fan_out, fan_in); bias as (fan_out, 1).
    kw, kb = jax.random.split(key)
    bound = 1.0 / jnp.sqrt(jnp.float32(fan_in))
    w = jax.random.uniform(kw, (fan_out, fan_in), jnp.float32, -bound, bound)
    b = jax.random.uniform(kb, (fan_out, 1), jnp.float32, -bound, bound)
    return w, b


def _reference(x, w1, b1, w2, b2, w3, b3):
    h1 = jnp.maximum(x @ w1.T + b1.T, 0.0)
    h2 = jnp.maximum(h1 @ w2.T + b2.T, 0.0)
    pG = jax.nn.sigmoid(h2 @ w3.T + b3.T)
    return (pG + 0.001) / (1.0 + 3 * 0.001)


if __name__ == "__main__":
    hidden = 32
    batch = 512          # small, but enough for a multi-step grid (grid = 4 below)
    block_b = 128

    key = jax.random.PRNGKey(0)
    kx, k1, k2, k3 = jax.random.split(key, 4)

    x = jax.random.normal(kx, (batch, 3), jnp.float32)
    w1, b1 = _init_linear(k1, 3, hidden)
    w2, b2 = _init_linear(k2, hidden, hidden)
    w3, b3 = _init_linear(k3, hidden, 3)

    ref = _reference(x, w1, b1, w2, b2, w3, b3)

    # f32 matmul path (exact vs reference)
    out = mlp_recon(x, w1, b1, w2, b2, w3, b3, block_b=block_b)
    out = jax.block_until_ready(out)
    assert out.shape == (batch, 3)
    assert jnp.allclose(out, ref, atol=1e-5, rtol=1e-5), "f32 path mismatch vs reference"

    # bf16-operand MXU path (perf lever on v5e/v6e/v7x); looser numeric tolerance
    out_bf16 = mlp_recon(x, w1, b1, w2, b2, w3, b3, block_b=block_b,
                         use_bf16_matmul=True)
    out_bf16 = jax.block_until_ready(out_bf16)
    assert jnp.allclose(out_bf16, ref, atol=5e-2, rtol=5e-2), "bf16 path mismatch vs reference"

    print("KERNEL_OK")
</pallas_src>

<mosaic_0001>
module attributes {stable_mosaic.version = 11 : i64} {
  func.func @mlp_recon_kernel(%arg0: i32, %arg1: memref<3x128xf32, #tpu.memory_space<vmem>>, %arg2: memref<32x3xf32, #tpu.memory_space<vmem>>, %arg3: memref<32x1xf32, #tpu.memory_space<vmem>>, %arg4: memref<32x32xf32, #tpu.memory_space<vmem>>, %arg5: memref<32x1xf32, #tpu.memory_space<vmem>>, %arg6: memref<3x32xf32, #tpu.memory_space<vmem>>, %arg7: memref<3x1xf32, #tpu.memory_space<vmem>>, %arg8: memref<3x128xf32, #tpu.memory_space<vmem>>) attributes {dimension_semantics = [#tpu.dimension_semantics<parallel>], iteration_bounds = array<i64: 4>, scalar_prefetch = 0 : i64, scratch_operands = 0 : i64, tpu.core_type = #tpu.core_type<tc>, window_params = [{transform_indices = @transform_0, window_bounds = array<i64: 3, 128>}, {pipeline_mode = #tpu.pipeline_mode<synchronous>, transform_indices = @transform_1, window_bounds = array<i64: 32, 3>}, {pipeline_mode = #tpu.pipeline_mode<synchronous>, transform_indices = @transform_2, window_bounds = array<i64: 32, 1>}, {pipeline_mode = #tpu.pipeline_mode<synchronous>, transform_indices = @transform_3, window_bounds = array<i64: 32, 32>}, {pipeline_mode = #tpu.pipeline_mode<synchronous>, transform_indices = @transform_4, window_bounds = array<i64: 32, 1>}, {pipeline_mode = #tpu.pipeline_mode<synchronous>, transform_indices = @transform_5, window_bounds = array<i64: 3, 32>}, {pipeline_mode = #tpu.pipeline_mode<synchronous>, transform_indices = @transform_6, window_bounds = array<i64: 3, 1>}, {transform_indices = @transform_7, window_bounds = array<i64: 3, 128>}]} {
    %c0 = arith.constant 0 : index
    %c0_0 = arith.constant 0 : index
    %0 = vector.load %arg1[%c0, %c0_0] : memref<3x128xf32, #tpu.memory_space<vmem>>, vector<3x128xf32>
    %c0_1 = arith.constant 0 : index
    %c0_2 = arith.constant 0 : index
    %1 = vector.load %arg2[%c0_1, %c0_2] : memref<32x3xf32, #tpu.memory_space<vmem>>, vector<32x3xf32>
    %2 = vector.extract_strided_slice %1 {offsets = [0, 0], sizes = [32, 1], strides = [1, 1]} : vector<32x3xf32> to vector<32x1xf32>
    %3 = vector.extract_strided_slice %0 {offsets = [0, 0], sizes = [1, 128], strides = [1, 1]} : vector<3x128xf32> to vector<1x128xf32>
    %4 = vector.broadcast %2 : vector<32x1xf32> to vector<32x128xf32>
    %5 = vector.broadcast %3 : vector<1x128xf32> to vector<32x128xf32>
    %6 = arith.mulf %4, %5 : vector<32x128xf32>
    %7 = vector.extract_strided_slice %1 {offsets = [0, 1], sizes = [32, 1], strides = [1, 1]} : vector<32x3xf32> to vector<32x1xf32>
    %8 = vector.extract_strided_slice %0 {offsets = [1, 0], sizes = [1, 128], strides = [1, 1]} : vector<3x128xf32> to vector<1x128xf32>
    %9 = vector.broadcast %7 : vector<32x1xf32> to vector<32x128xf32>
    %10 = vector.broadcast %8 : vector<1x128xf32> to vector<32x128xf32>
    %11 = arith.mulf %9, %10 : vector<32x128xf32>
    %12 = arith.addf %6, %11 : vector<32x128xf32>
    %13 = vector.extract_strided_slice %1 {offsets = [0, 2], sizes = [32, 1], strides = [1, 1]} : vector<32x3xf32> to vector<32x1xf32>
    %14 = vector.extract_strided_slice %0 {offsets = [2, 0], sizes = [1, 128], strides = [1, 1]} : vector<3x128xf32> to vector<1x128xf32>
    %15 = vector.broadcast %13 : vector<32x1xf32> to vector<32x128xf32>
    %16 = vector.broadcast %14 : vector<1x128xf32> to vector<32x128xf32>
    %17 = arith.mulf %15, %16 : vector<32x128xf32>
    %18 = arith.addf %12, %17 : vector<32x128xf32>
    %c0_3 = arith.constant 0 : index
    %c0_4 = arith.constant 0 : index
    %19 = vector.load %arg3[%c0_3, %c0_4] : memref<32x1xf32, #tpu.memory_space<vmem>>, vector<32x1xf32>
    %20 = vector.broadcast %19 : vector<32x1xf32> to vector<32x128xf32>
    %21 = arith.addf %18, %20 : vector<32x128xf32>
    %cst = arith.constant 0.000000e+00 : f32
    %22 = vector.broadcast %cst : f32 to vector<32x128xf32>
    %23 = arith.maximumf %21, %22 : vector<32x128xf32>
    %c0_5 = arith.constant 0 : index
    %c0_6 = arith.constant 0 : index
    %24 = vector.load %arg4[%c0_5, %c0_6] : memref<32x32xf32, #tpu.memory_space<vmem>>, vector<32x32xf32>
    %cst_7 = arith.constant dense<0.000000e+00> : vector<32x128xf32>
    %25 = tpu.matmul %24, %23, %cst_7 {dimension_numbers = #tpu.dot_dimension_numbers<[1], [0], [0], [1], [0, 0, 1, 1], [], []>} : vector<32x32xf32>, vector<32x128xf32>, vector<32x128xf32> -> vector<32x128xf32>
    %c0_8 = arith.constant 0 : index
    %c0_9 = arith.constant 0 : index
    %26 = vector.load %arg5[%c0_8, %c0_9] : memref<32x1xf32, #tpu.memory_space<vmem>>, vector<32x1xf32>
    %27 = vector.broadcast %26 : vector<32x1xf32> to vector<32x128xf32>
    %28 = arith.addf %25, %27 : vector<32x128xf32>
    %cst_10 = arith.constant 0.000000e+00 : f32
    %29 = vector.broadcast %cst_10 : f32 to vector<32x128xf32>
    %30 = arith.maximumf %28, %29 : vector<32x128xf32>
    %c0_11 = arith.constant 0 : index
    %c0_12 = arith.constant 0 : index
    %31 = vector.load %arg6[%c0_11, %c0_12] : memref<3x32xf32, #tpu.memory_space<vmem>>, vector<3x32xf32>
    %cst_13 = arith.constant dense<0.000000e+00> : vector<3x128xf32>
    %32 = tpu.matmul %31, %30, %cst_13 {dimension_numbers = #tpu.dot_dimension_numbers<[1], [0], [0], [1], [0, 0, 1, 1], [], []>} : vector<3x32xf32>, vector<32x128xf32>, vector<3x128xf32> -> vector<3x128xf32>
    %c0_14 = arith.constant 0 : index
    %c0_15 = arith.constant 0 : index
    %33 = vector.load %arg7[%c0_14, %c0_15] : memref<3x1xf32, #tpu.memory_space<vmem>>, vector<3x1xf32>
    %34 = vector.broadcast %33 : vector<3x1xf32> to vector<3x128xf32>
    %35 = arith.addf %32, %34 : vector<3x128xf32>
    %36 = arith.negf %35 : vector<3x128xf32>
    %37 = math.exp %36 : vector<3x128xf32>
    %cst_16 = arith.constant 1.000000e+00 : f32
    %38 = vector.broadcast %cst_16 : f32 to vector<3x128xf32>
    %39 = arith.addf %38, %37 : vector<3x128xf32>
    %40 = arith.divf %38, %39 : vector<3x128xf32>
    %cst_17 = arith.constant 1.000000e-03 : f32
    %41 = vector.broadcast %cst_17 : f32 to vector<3x128xf32>
    %42 = arith.addf %40, %41 : vector<3x128xf32>
    %cst_18 = arith.constant 0.997008979 : f32
    %43 = vector.broadcast %cst_18 : f32 to vector<3x128xf32>
    %44 = arith.mulf %42, %43 : vector<3x128xf32>
    %c0_19 = arith.constant 0 : index
    %c0_20 = arith.constant 0 : index
    %45 = vector.load %arg8[%c0_19, %c0_20] : memref<3x128xf32, #tpu.memory_space<vmem>>, vector<3x128xf32>
    tpu.vector_store %arg8[%c0_19, %c0_20], %44 {strides = array<i32>} : memref<3x128xf32, #tpu.memory_space<vmem>>, vector<3x128xf32>,
    return
  }
  func.func @transform_0(%arg0: i32) -> (i32, i32) {
    %c0_i32 = arith.constant 0 : i32
    %c0_i32_0 = arith.constant 0 : i32
    return %c0_i32, %arg0 : i32, i32
  }
  func.func @transform_1(%arg0: i32) -> (i32, i32) {
    %c0_i32 = arith.constant 0 : i32
    %c0_i32_0 = arith.constant 0 : i32
    %c0_i32_1 = arith.constant 0 : i32
    return %c0_i32, %c0_i32_0 : i32, i32
  }
  func.func @transform_2(%arg0: i32) -> (i32, i32) {
    %c0_i32 = arith.constant 0 : i32
    %c0_i32_0 = arith.constant 0 : i32
    %c0_i32_1 = arith.constant 0 : i32
    return %c0_i32, %c0_i32_0 : i32, i32
  }
  func.func @transform_3(%arg0: i32) -> (i32, i32) {
    %c0_i32 = arith.constant 0 : i32
    %c0_i32_0 = arith.constant 0 : i32
    %c0_i32_1 = arith.constant 0 : i32
    return %c0_i32, %c0_i32_0 : i32, i32
  }
  func.func @transform_4(%arg0: i32) -> (i32, i32) {
    %c0_i32 = arith.constant 0 : i32
    %c0_i32_0 = arith.constant 0 : i32
    %c0_i32_1 = arith.constant 0 : i32
    return %c0_i32, %c0_i32_0 : i32, i32
  }
  func.func @transform_5(%arg0: i32) -> (i32, i32) {
    %c0_i32 = arith.constant 0 : i32
    %c0_i32_0 = arith.constant 0 : i32
    %c0_i32_1 = arith.constant 0 : i32
    return %c0_i32, %c0_i32_0 : i32, i32
  }
  func.func @transform_6(%arg0: i32) -> (i32, i32) {
    %c0_i32 = arith.constant 0 : i32
    %c0_i32_0 = arith.constant 0 : i32
    %c0_i32_1 = arith.constant 0 : i32
    return %c0_i32, %c0_i32_0 : i32, i32
  }
  func.func @transform_7(%arg0: i32) -> (i32, i32) {
    %c0_i32 = arith.constant 0 : i32
    %c0_i32_0 = arith.constant 0 : i32
    return %c0_i32, %arg0 : i32, i32
  }
}

</mosaic_0001>

<bundles_post_ra>
// kernel: tpu_custom_call.1
= control target key start
LH: loop header
LB: loop body
LE: loop exit
PB: predicated region body
PF: predicated region fallthrough
CT: control target
= control target key end

     0   :  { %12 = vsyncpa [#allocation3], 0  ;;  %s1082_s0 = inlined_call_operand.vmem [shape: f32[3,512], index: 0, kind: input, shape index: {}]   ;;  %s1083_s1 = inlined_call_operand.vmem [shape: f32[32,3], index: 1, kind: input, shape index: {}]   ;;  %s1084_s2 = inlined_call_operand.vmem [shape: f32[32,1], index: 2, kind: input, shape index: {}]   ;;  %s1085_s3 = inlined_call_operand.vmem [shape: f32[32,32], index: 3, kind: input, shape index: {}]   ;;  %s1086_s4 = inlined_call_operand.vmem [shape: f32[32,1], index: 4, kind: input, shape index: {}]   ;;  %s1087_s5 = inlined_call_operand.vmem [shape: f32[3,32], index: 5, kind: input, shape index: {}]   ;;  %s1088_s6 = inlined_call_operand.vmem [shape: f32[3,1], index: 6, kind: input, shape index: {}]   ;;  %s1089_s7 = inlined_call_operand.hbm [shape: f32[3,512], index: 7, kind: output, shape index: {}]  }
   0x1   :  { %14 = vsyncpa [#allocation3 + $0x1], 0  ;;  %s923_s24 = smov 0   ;;  %s925_s25 = smov 0  }
   0x2   :  { %s927_s26 = smov 0   ;;  %s929_s27 = smov 0  }
   0x3 LB: > { %s944_s28 = sadd.s32 4294967295, %s874_s27   ;;  %s687_s29 = sadd.s32 4294967294, %s874_s27   ;;  %s874_s27 = sphi %s929_s27, %s1095_s27   ;;  %s870_s26 = sphi %s927_s26, %s1094_s26   ;;  %s866_s25 = sphi %s925_s25, %s1093_s25   ;;  %s862_s24 = sphi %s923_s24, %s1092_s24  }
   0x4   : > { %s948_s30 = sadd.s32 1, %s874_s27   ;;  %s179_s8 = sadd.s32 1, %s870_s26 }
   0x5   : > { %s176_s9 = ssub.s32 %s874_s27, %s948_s30  ;;  %p189_p0 = scmp.ne.s32.totalorder %s870_s26, %s866_s25 }
   0x6   : > { %p177_p1 = scmp.eq.s32.totalorder %s176_s9, 0  ;;  %p190_p2 = scmp.eq.s32.totalorder %s944_s28, 3 }
   0x7   : > { %p195_p3 = scmp.ne.s32.totalorder %s866_s25, %s862_s24  ;;  %p196_p4 = scmp.eq.s32.totalorder %s687_s29, 3 }
   0x8   : > { %s959_s10 = scalar_select %p177_p1, %s870_s26, %s179_s8  }
   0x9   : > { %p961_p5 = por %p190_p2, %p189_p0  ;;  %p965_p6 = por %p196_p4, %p195_p3 }
   0xa   : > { %p690_p7 = scmp.ge.s32.totalorder %s874_s27, 1  ;;  %p239_p8 = scmp.lt.s32.totalorder %s874_s27, 5 }
   0xc   : > { %p240_p9 = pnand %p690_p7, %p239_p8 }
   0xd   : > { %v275_v0 = vld [vmem:[%s1083_s1] sm:$0xff] (!%p240_p9)  ;;  %v876_v1 = vmov (!%p240_p9), 2   ;;  %v877_v2 = vmov (!%p240_p9), 1   ;;  %v277_v3 = vld [vmem:[%s1083_s1 + $0x10] sm:$0xff] (!%p240_p9)  ;;  %v276_v4 = vld [vmem:[%s1083_s1 + $0x8] sm:$0xff] (!%p240_p9)  ;;  %v878_v5 = vmov (!%p240_p9), 0   ;;  %v299_v22 = vlaneseq (!%p240_p9) }
   0xe   : > { %243 = sbr.rel (%p240_p9) target bundleno = 678 (0x2a6), region = 48  ;;  %801 = vset.pattern.permute.xlu0 (!%p240_p9), %v876_v1  ;;  %800 = vset.pattern.permute.xlu1 (!%p240_p9), %v877_v2  ;;  %v278_v6 = vld [vmem:[%s1083_s1 + $0x18] sm:$0xff] (!%p240_p9)  ;;  %v364_v7 = vld [vmem:[%s1084_s2 + $0x8] sm:$0xff] (!%p240_p9)  ;;  %v399_v8 = vld [vmem:[%s1086_s4] sm:$0xff] (!%p240_p9)  ;;  %vm423_vm0 = vcmask (!%p240_p9), 261120   ;;  %p270_p10 = scmp.lt.s32.totalorder (!%p240_p9), %s944_s28, 3 }
   0xf   : > { %336 = vperm.xlu0 (!%p240_p9), %801, %v275_v0   ;;  %308 = vperm.xlu1 (!%p240_p9), %800, %v275_v0   ;;  %v401_v9 = vld [vmem:[%s1086_s4 + $0x10] sm:$0xff] (!%p240_p9)  ;;  %v526_v10 = vld [vmem:[%s1088_s6] sm:$0x7] (!%p240_p9)  ;;  %v366_v13 = vld [vmem:[%s1084_s2 + $0x18] sm:$0xff] (!%p240_p9)  ;;  %v300_v24 = vshrl.u32 (!%p240_p9), %v299_v22, 7  ;;  %vm880_vm1 = vmmov (!%p240_p9), 0  }
  0x10   : > { %v363_v11 = vld [vmem:[%s1084_s2] sm:$0xff] (!%p240_p9)  ;;  %v365_v12 = vld [vmem:[%s1084_s2 + $0x10] sm:$0xff] (!%p240_p9)  ;;  %v400_v14 = vld [vmem:[%s1086_s4 + $0x8] sm:$0xff] (!%p240_p9)  ;;  %s267_s9 = sand.u32 (!%p240_p9), 1, %s866_s25  }
  0x11   : > { %v402_v15 = vld [vmem:[%s1086_s4 + $0x18] sm:$0xff] (!%p240_p9)  ;;  %v395_v16 = vld [vmem:[%s1085_s3] sm:$0xff] (!%p240_p9)  ;;  %v301_v26 = vsub.s32 (!%p240_p9), 0, %v300_v24  ;;  %v325_v28 = vsub.s32 (!%p240_p9), 1, %v300_v24  ;;  %v353_v31 = vsub.s32 (!%p240_p9), 2, %v300_v24  ;;  %s615_s20 = scalar_lea.sflag (!%p240_p9), [#allocation3], %s267_s9 }
  0x12   : > { %724 = vmatprep.mubr.msk.f32.mxu0 (!%p240_p9), %vm423_vm0, %v395_v16 }
  0x13   : > { %344 = vperm.xlu0 (!%p240_p9), %801, %v277_v3   ;;  %312 = vperm.xlu1 (!%p240_p9), %800, %v276_v4  }
  0x15   : > { %s271_s13 = scalar_select %p270_p10, %s944_s28, 3 }
  0x17   : > { %805 = vset.pattern.permute.xlu0 %v878_v5  ;;  %802 = vset.pattern.permute.xlu1 %v876_v1  ;;  %s692_s14 = sshll.u32 %s271_s13, 2  ;;  %s691_s13 = sshll.u32 %s267_s9, 2 }
  0x18   : > { %281 = vperm.xlu0 %805, %v275_v0   ;;  %340 = vperm.xlu1 %802, %v276_v4   ;;  %s273_s17 = scalar_lea.vmem %s1082_s0, %s692_s14  ;;  %s700_s14 = sshll.u32 %s944_s28, 6 }
  0x19   : > { %v274_v29 = vld [vmem:[%s273_s17] sm:$0x7]  ;;  %s269_s15 = scalar_lea.vmem [#allocation2], %s691_s13  ;;  %s1040_s19 = scalar_lea.hbm %s1089_s7, %s700_s14 }
  0x1a   : > { %v302_v32 = vrot.slane %v274_v29, %v301_v26  ;;  %v326_v33 = vrot.slane %v274_v29, %v325_v28  ;;  %v354_v37 = vrot.slane %v274_v29, %v353_v31  ;;  %v525_v31 = vld [vmem:[%s1087_s5] sm:$0x7]  ;;  %s628_s16 = sshll.u32 %s269_s15, 4  ;;  %s882_s28 = smov [#allocation2]   ;;  %s1042_s16 = int_to_ptr.vmem [resolvable:$true] %s628_s16 }
  0x1b   : > { %s812_s21 = scalar_lea.vmem %s1042_s16, 64  ;;  %s816_s22 = sshll.u32 %s882_s28, 4  ;;  %s817_s22 = int_to_ptr.vmem [resolvable:$false] %s816_s22 }
  0x1c   : > { %286 = vperm.xlu0 %805, %v276_v4   ;;  %803 = vset.pattern.permute.xlu1 %v878_v5  ;;  %p813_p11 = scmp.ne.s32.totalorder %s1042_s16, %s812_s21  ;;  %s818_s23 = scalar_lea.vmem %s817_s22, 128 }
  0x1d   : > { %291 = vperm.xlu1 %803, %v277_v3   ;;  %p819_p0 = scmp.lt.s32.totalorder %s1042_s16, %s817_s22  ;;  %p820_p1 = scmp.lt.s32.totalorder %s818_s23, %s812_s21 }
  0x1e   : > { %p814_p12 = pnand %p813_p11, %p961_p5 }
  0x1f   : > { %p821_p2 = por %p820_p1, %p819_p0 }
  0x20   : > { %296 = vperm.xlu0 %805, %v278_v6   ;;  %p815_p13 = pneg %p814_p12 }
  0x21   : > { %804 = vset.pattern.permute.xlu1 %v877_v2 }
  0x22   : > { %316 = vperm.xlu1 %804, %v277_v3   ;;  %p822_p3 = pnand %p821_p2, %p815_p13 }
  0x24   : > { %374 = vperm.xlu0 %805, %v364_v7  }
  0x26   : > { %320 = vperm.xlu1 %804, %v278_v6  }
  0x28   : > { %405 = vperm.xlu0 %805, %v399_v8   ;;  %v396_v8 = vld [vmem:[%s1085_s3 + $0x8] sm:$0xff] }
  0x2a   : > { %806 = vset.pattern.permute.xlu1 %v876_v1 }
  0x2b   : > { %348 = vperm.xlu1 %806, %v278_v6  }
  0x2c   : > { %415 = vperm.xlu0 %805, %v401_v9   ;;  %v397_v9 = vld [vmem:[%s1085_s3 + $0x10] sm:$0xff] }
  0x2f   : > { %807 = vset.pattern.permute.xlu1 %v878_v5 }
  0x30   : > { %529 = vperm.xlu0 %805, %v526_v10   ;;  %369 = vperm.xlu1 %807, %v363_v11   ;;  %v398_v10 = vld [vmem:[%s1085_s3 + $0x18] sm:$0xff]  ;;  %v879_v11 = vmov 0.0|0.0  }
  0x31   : > { %749 = vmatprep.subr.bf16.mxu1 %v879_v11 }
  0x34   : > { %379 = vperm.xlu1 %807, %v365_v12   ;;  %v881_v12 = vmov 0.0  }
  0x35   : > { %738 = vmatprep.mubr.msk.f32.mxu1 %vm880_vm1, %v881_v12 }
  0x38   : > { %384 = vperm.xlu1 %807, %v366_v13  }
  0x3c   : > { %410 = vperm.xlu1 %807, %v400_v14  }
  0x40   : > { %420 = vperm.xlu1 %807, %v402_v15  }
  0x8e   : > { %v309_v17 = vpop.permute.xlu1 %308  ;;  %v337_v18 = vpop.permute.xlu0 %336 }
  0x8f   : > { %v327_v40 = vmul.f32 %v326_v33, %v309_v17  ;;  %v355_v42 = vmul.f32 %v354_v37, %v337_v18 }
  0x92   : > { %v313_v19 = vpop.permute.xlu1 %312  ;;  %v345_v20 = vpop.permute.xlu0 %344 }
  0x93   : > { %v328_v38 = vmul.f32 %v326_v33, %v313_v19  ;;  %v357_v57 = vmul.f32 %v354_v37, %v345_v20 }
  0x97   : > { %v341_v21 = vpop.permute.xlu1 %340  ;;  %v282_v23 = vpop.permute.xlu0 %281 }
  0x98   : > { %v303_v39 = vmul.f32 %v302_v32, %v282_v23  ;;  %v356_v44 = vmul.f32 %v354_v37, %v341_v21 }
  0x9a   : > { %v331_v43 = vadd.f32 %v327_v40, %v303_v39 }
  0x9b   : > { %v287_v27 = vpop.permute.xlu0 %286 }
  0x9c   : > { %v292_v25 = vpop.permute.xlu1 %291  ;;  %v304_v34 = vmul.f32 %v302_v32, %v287_v27  ;;  %v359_v51 = vadd.f32 %v355_v42, %v331_v43 }
  0x9d   : > { %v305_v49 = vmul.f32 %v302_v32, %v292_v25 }
  0x9e   : > { %v332_v41 = vadd.f32 %v328_v38, %v304_v34 }
  0x9f   : > { %v297_v35 = vpop.permute.xlu0 %296 }
  0xa0   : > { %v360_v48 = vadd.f32 %v356_v44, %v332_v41  ;;  %v306_v53 = vmul.f32 %v302_v32, %v297_v35 }
  0xa1   : > { %v317_v30 = vpop.permute.xlu1 %316 }
  0xa2   : > { %v329_v47 = vmul.f32 %v326_v33, %v317_v30 }
  0xa3   : > { %v375_v46 = vpop.permute.xlu0 %374 }
  0xa4   : > { %v388_v50 = vadd.f32 %v375_v46, %v360_v48  ;;  %v333_v54 = vadd.f32 %v329_v47, %v305_v49 }
  0xa5   : > { %v321_v36 = vpop.permute.xlu1 %320 }
  0xa6   : > { %v330_v55 = vmul.f32 %v326_v33, %v321_v36  ;;  %v392_v58 = vmax.f32 %v388_v50, 0.0  ;;  %v361_v63 = vadd.f32 %v357_v57, %v333_v54 }
  0xa7   : > { %v406_v14 = vpop.permute.xlu0 %405 }
  0xa8   : > { %v334_v62 = vadd.f32 %v330_v55, %v306_v53 }
  0xaa   : > { %v349_v45 = vpop.permute.xlu1 %348 }
  0xab   : > { %v358_v59 = vmul.f32 %v354_v37, %v349_v45  ;;  %v416_v23 = vpop.permute.xlu0 %415 }
  0xad   : > { %v362_v2 = vadd.f32 %v358_v59, %v334_v62 }
  0xaf   : > { %v370_v52 = vpop.permute.xlu1 %369  ;;  %v530_v32 = vpop.permute.xlu0 %529 }
  0xb0   : > { %v387_v56 = vadd.f32 %v370_v52, %v359_v51 }
  0xb2   : > { %v391_v60 = vmax.f32 %v387_v56, 0.0 }
  0xb3   : > { %v380_v61 = vpop.permute.xlu1 %379 }
  0xb4   : > { %v741_v0 = vpack.c.bf16 %v392_v58, %v391_v60  ;;  %v389_v1 = vadd.f32 %v380_v61, %v361_v63 }
  0xb6   : > { %742 = vmatprep.subr.bf16.mxu0 %v741_v0  ;;  %v393_v5 = vmax.f32 %v389_v1, 0.0 }
  0xb7   : > { %v385_v3 = vpop.permute.xlu1 %384  ;;  %744 = vmatpush3.bf16.msra.mxu0 %v741_v0 }
  0xb8   : > { %v390_v4 = vadd.f32 %v385_v3, %v362_v2 }
  0xba   : > { %v394_v6 = vmax.f32 %v390_v4, 0.0 }
  0xbb   : > { %v411_v13 = vpop.permute.xlu1 %410 }
  0xbc   : > { %v745_v7 = vpack.c.bf16 %v394_v6, %v393_v5 }
  0xbe   : > { %746 = vmatprep.subr.bf16.mxu0 %v745_v7 }
  0xbf   : > { %748 = vmatpush3.bf16.msra.mxu0 %v745_v7  ;;  %v421_v20 = vpop.permute.xlu1 %420 }
  0xc2   : > { %725 = vmatmul.mubr.msk.f32.vlgmr.msra.gmra.mrb[0].mxu0 %vm423_vm0, %v396_v8 }
  0xc3   : > { %727 = vmatprep.mubr.msk.f32.mxu0 %vm423_vm0, %v397_v9 }
  0xc6   : > { %728 = vmatmul.mubr.msk.f32.gmra.mrb[2].mxu0 %vm423_vm0, %v398_v10 }
 0x195   : > { %v726_v15 = vpop.f32.mrb[0].mxu0 }
 0x196   : > { %v508_v16 = vadd.f32 %v726_v15, %v411_v13  ;;  %v502_v17 = vpop.f32.mrb[1].mxu0 }
 0x197   : > { %v503_v18 = vadd.f32 %v502_v17, %v406_v14 }
 0x198   : > { %v522_v19 = vmax.f32 %v508_v16, 0.0 }
 0x199   : > { %v521_v21 = vmax.f32 %v503_v18, 0.0  ;;  %v729_v22 = vpop.f32.mrb[2].mxu0 }
 0x19a   : > { %v518_v24 = vadd.f32 %v729_v22, %v421_v20  ;;  %v512_v25 = vpop.f32.mrb[3].mxu0 }
 0x19b   : > { %v513_v26 = vadd.f32 %v512_v25, %v416_v23  ;;  %v750_v27 = vpack.c.bf16 %v522_v19, %v521_v21 }
 0x19c   : > { %v524_v28 = vmax.f32 %v518_v24, 0.0 }
 0x19d   : > { %v523_v29 = vmax.f32 %v513_v26, 0.0  ;;  %751 = vmatpush3.bf16.msra.mxu1 %v750_v27 }
 0x19e   : > { %752 = vmatprep.subr.bf16.mxu1 %v879_v11 }
 0x19f   : > { %v753_v30 = vpack.c.bf16 %v524_v28, %v523_v29 }
 0x1a1   : > { %754 = vmatpush3.bf16.msra.mxu1 %v753_v30 }
 0x1a4   : > { %739 = vmatmul.mubr.msk.f32.vlgmr.msra.gmra.mrb[0].mxu1 %vm423_vm0, %v525_v31 }
 0x277   : > { %v601_v33 = vpop.f32.mrb[0].mxu1 }
 0x278   : > { %v602_v34 = vadd.f32 %v601_v33, %v530_v32  ;;  %v740_v35 = vpop.f32.mrb[1].mxu1 }
 0x27a   : > { %v698_v36 = vmul.f32 -1.442695, %v602_v34 }
 0x27c   : > { %808 = vpow2.f32 %v698_v36 }
 0x286   : > { %v809_v37 = vpop.eup %808 }
 0x287   : > { %v608_v38 = vadd.f32 1.0, %v809_v37 }
 0x289   : > { %810 = vrcp.f32 %v608_v38 }
 0x293   : > { %v811_v39 = vpop.eup %810 }
 0x294   : > { %v611_v40 = vadd.f32 0.001, %v811_v39 }
 0x296   : > { %v612_v41 = vmul.f32 0.997009, %v611_v40 }
 0x298   : > { %613 = vst [vmem:[%s269_s15] sm:$0x7] %v612_v41 }
 0x299   : > { %825 = shalt.err (!%p822_p3)
}
 0x29a   : > { %s826_s29 = scalar_lea.hbm %s1040_s19, 64  ;;  %s830_s13 = scalar_lea.hbm %s1089_s7, 256 }
 0x29b   : > { %p827_p4 = scmp.ne.s32.totalorder %s1040_s19, %s826_s29  ;;  %p831_p9 = scmp.lt.u32.totalorder %s1040_s19, %s1089_s7 }
 0x29c   : > { %p832_p10 = scmp.lt.u32.totalorder %s830_s13, %s826_s29  ;;  %p834_p12 = scmp.lt.u32.totalorder %s826_s29, %s1040_s19 }
 0x29d   : > { %p828_p7 = pnand %p827_p4, %p961_p5 }
 0x29e   : > { %p833_p11 = por %p832_p10, %p831_p9 }
 0x29f   : > { %p829_p8 = pneg %p828_p7 }
 0x2a0   : > { %p835_p13 = por %p834_p12, %p833_p11 }
 0x2a2   : > { %p836_p0 = pnand %p835_p13, %p829_p8 }
 0x2a4   : > { %839 = shalt.err (!%p836_p0)
}
 0x2a5   : > { %755 = dma.vmem_to_hbm [thread:$0]  (%p961_p5), %s1042_s16, 64, %s1040_s19, %s615_s20  }
 0x2a6 PF: > { %p761_p1 = scmp.ge.s32.totalorder %s874_s27, 2  ;;  %s640_s17 = sand.u32 1, %s862_s24  }
 0x2a7   : > { %s641_s18 = scalar_lea.sflag [#allocation3], %s640_s17 }
 0x2a8   : > { %p758_p2 = pnand %p761_p1, %p965_p6 }
 0x2aa   : > { %857 = dma.done.wait (!%p758_p2), %s641_s18, 64  }
 0x2ab   : > { %859 = vsyncadd (!%p758_p2), %s641_s18, 4294967232  ;;  %p17_p3 = scmp.ge.s32.totalorder %s948_s30, 6   ;;  %s1092_s24 = smov %s866_s25 }
 0x2ac   : > { %s1093_s25 = smov %s870_s26  ;;  %s1094_s26 = smov %s959_s10 }
 0x2ad   : > { %s1095_s27 = smov %s948_s30  ;;  %19 = sbr.rel (!%p17_p3) target bundleno = 3 (0x3), region = 83 }
 0x2b4   :  { %646 = vsyncpa [#allocation3], 1 }
 0x2b5   :  { %648 = vsyncpa [#allocation3 + $0x1], 1 }

</bundles_post_ra>
